<compile_context>
chip_gen: v7x
topology: tpu7x:2x2x1
jax: 0.10.0
libtpu: 0.0.40
codegen_flags: <defaults>
</compile_context>

<pallas_src>
import jax
import jax.numpy as jnp
from jax import lax
from jax.experimental import pallas as pl
from jax.experimental.pallas import tpu as pltpu


def xgb_forward_kernel(x_ref, wt_ref, b_ref, o_ref):
    # Transposed scorer: logits_t[c, r] = sum_f W_T[c, f] * X[r, f]   (MXU matmul).
    # Contracting over the last dim of both operands (the q @ k.T pattern) keeps the
    # result lane-dense: classes on sublanes, rows on lanes.
    logits_t = lax.dot_general(
        wt_ref[...], x_ref[...],
        dimension_numbers=(((1,), (1,)), ((), ())),
        preferred_element_type=jnp.float32,
    )                                                              # (C_pad, TM)
    logits_t = logits_t + b_ref[...]                               # (C_pad, 1) lane-broadcast

    c_pad = logits_t.shape[0]
    # argmax over the tiny sublane (class) axis with lowest-index tie-break
    # (matches np.argmax); every vector op stays lane-dense.
    col_max = jnp.max(logits_t, axis=0, keepdims=True)             # (1, TM)
    cls_iota = lax.broadcasted_iota(jnp.int32, logits_t.shape, 0)  # (C_pad, TM)
    cands = jnp.where(logits_t >= col_max, cls_iota, c_pad)        # non-max -> sentinel
    pred = jnp.min(cands, axis=0, keepdims=True)                   # (1, TM)

    # Lane-dense one-hot: full 128-lane stores instead of masked few-lane stores.
    o_ref[...] = (cls_iota == pred).astype(jnp.float32)            # (C_pad, TM)


def xgboost_forward(x, w, b, *, vmem_data_budget_bytes=16 * 1024 * 1024):
    """x: (N, F), w: (F, C), b: (C,)  ->  (N, C) float32 one-hot of the argmax class."""
    N, F = x.shape
    C = w.shape[1]
    C_pad = max(8, -(-C // 8) * 8)  # pad class dim to a sublane multiple

    # Padded per-class params.  Padded classes get a huge negative bias so they can
    # never win the argmax; their one-hot rows are all-zero and sliced away below.
    wt = jnp.zeros((C_pad, F), jnp.float32).at[:C, :].set(w.T.astype(jnp.float32))
    b_col = jnp.full((C_pad, 1), -1e30, jnp.float32).at[:C, 0].set(b.astype(jnp.float32))

    # Row-tile selection: biggest multiple of 128 (<= 8192) whose double-buffered
    # X + one-hot tiles fit the VMEM data budget.  Small N -> one full-array block.
    per_row_bytes = 2 * (F + C_pad) * 4          # double-buffered f32 rows (in + out)
    cap = min(8192, max(128, (vmem_data_budget_bytes // per_row_bytes) // 128 * 128))
    if N <= cap:
        tile_m, n_pad = N, N                     # single grid point, full-array blocks
    else:
        tile_m = cap
        n_pad = -(-N // tile_m) * tile_m         # pad rows so tile_m stays a free knob

    x32 = x.astype(jnp.float32)
    x_in = x32 if n_pad == N else jnp.pad(x32, ((0, n_pad - N), (0, 0)))

    grid_spec = pltpu.PrefetchScalarGridSpec(
        num_scalar_prefetch=0,
        grid=(n_pad // tile_m,),
        in_specs=[
            pl.BlockSpec((tile_m, F), lambda i: (i, 0)),   # row tile of X (dominant stream)
            pl.BlockSpec((C_pad, F), lambda i: (0, 0)),    # W^T: grid-invariant, resident
            pl.BlockSpec((C_pad, 1), lambda i: (0, 0)),    # bias column: grid-invariant
        ],
        out_specs=pl.BlockSpec((C_pad, tile_m), lambda i: (0, i)),  # lane-dense one-hot
    )

    out_t = pl.pallas_call(
        xgb_forward_kernel,
        out_shape=jax.ShapeDtypeStruct((C_pad, n_pad), jnp.float32),
        grid_spec=grid_spec,
        compiler_params=pltpu.CompilerParams(
            dimension_semantics=("parallel",),
            vmem_limit_bytes=32 * 1024 * 1024,   # explicit; tile gate uses the same budget
        ),
    )(x_in, wt, b_col)

    # (C_pad, N_pad) -> (N, C): cheap layout plumbing on a tiny array.
    return out_t[:C, :N].T


def _reference(x, w, b):
    logits = x.astype(jnp.float32) @ w + b
    pred = jnp.argmax(logits, axis=-1)
    return jax.nn.one_hot(pred, w.shape[1], dtype=jnp.float32)


if __name__ == "__main__":
    key = jax.random.PRNGKey(0)
    kx, kw, kb = jax.random.split(key, 3)

    N, F, C = 256, 32, 4  # small tabular problem: 256 samples, 32 features, 4 classes

    x = jax.random.normal(kx, (N, F), dtype=jnp.float32)
    # deterministic "fitted" gblinear-style parameters
    w = jax.random.normal(kw, (F, C), dtype=jnp.float32) * 0.1
    b = jax.random.normal(kb, (C,), dtype=jnp.float32) * 0.01

    out = xgboost_forward(x, w, b)
    out = jax.block_until_ready(out)

    ref = _reference(x, w, b)
    assert out.shape == (N, C) and out.dtype == jnp.float32
    assert bool(jnp.all(out.sum(axis=-1) == 1.0))
    assert bool(jnp.all(out == ref))

    print("KERNEL_OK")
</pallas_src>

<mosaic_0001>
module attributes {stable_mosaic.version = 11 : i64} {
  func.func @xgb_forward_kernel(%arg0: i32, %arg1: memref<256x32xf32, #tpu.memory_space<vmem>>, %arg2: memref<8x32xf32, #tpu.memory_space<vmem>>, %arg3: memref<8x1xf32, #tpu.memory_space<vmem>>, %arg4: memref<8x256xf32, #tpu.memory_space<vmem>>) attributes {dimension_semantics = [#tpu.dimension_semantics<parallel>], iteration_bounds = array<i64: 1>, scalar_prefetch = 0 : i64, scratch_operands = 0 : i64, tpu.core_type = #tpu.core_type<tc>, window_params = [{transform_indices = @transform_0, window_bounds = array<i64: 256, 32>}, {pipeline_mode = #tpu.pipeline_mode<synchronous>, transform_indices = @transform_1, window_bounds = array<i64: 8, 32>}, {pipeline_mode = #tpu.pipeline_mode<synchronous>, transform_indices = @transform_2, window_bounds = array<i64: 8, 1>}, {transform_indices = @transform_3, window_bounds = array<i64: 8, 256>}]} {
    %c0 = arith.constant 0 : index
    %c0_0 = arith.constant 0 : index
    %0 = vector.load %arg2[%c0, %c0_0] : memref<8x32xf32, #tpu.memory_space<vmem>>, vector<8x32xf32>
    %c0_1 = arith.constant 0 : index
    %c0_2 = arith.constant 0 : index
    %1 = vector.load %arg1[%c0_1, %c0_2] : memref<256x32xf32, #tpu.memory_space<vmem>>, vector<256x32xf32>
    %cst = arith.constant dense<0.000000e+00> : vector<8x256xf32>
    %2 = tpu.matmul %0, %1, %cst {dimension_numbers = #tpu.dot_dimension_numbers<[1], [1], [0], [0], [0, 0, 1, 0], [], []>} : vector<8x32xf32>, vector<256x32xf32>, vector<8x256xf32> -> vector<8x256xf32>
    %c0_3 = arith.constant 0 : index
    %c0_4 = arith.constant 0 : index
    %3 = vector.load %arg3[%c0_3, %c0_4] : memref<8x1xf32, #tpu.memory_space<vmem>>, vector<8x1xf32>
    %4 = vector.broadcast %3 : vector<8x1xf32> to vector<8x256xf32>
    %5 = arith.addf %2, %4 : vector<8x256xf32>
    %cst_5 = arith.constant dense<0xFF800000> : vector<256xf32>
    %6 = vector.multi_reduction <maximumf>, %5, %cst_5 [0] : vector<8x256xf32> to vector<256xf32>
    %7 = vector.shape_cast %6 : vector<256xf32> to vector<1x256xf32>
    %8 = tpu.iota {dimensions = array<i32: 0>} : vector<8x256xi32>
    %9 = vector.broadcast %7 : vector<1x256xf32> to vector<8x256xf32>
    %10 = arith.cmpf oge, %5, %9 : vector<8x256xf32>
    %c8_i32 = arith.constant 8 : i32
    %11 = vector.broadcast %c8_i32 : i32 to vector<8x256xi32>
    %12 = arith.select %10, %8, %11 : vector<8x256xi1>, vector<8x256xi32>
    %cst_6 = arith.constant dense<2147483647> : vector<256xi32>
    %13 = vector.multi_reduction <minsi>, %12, %cst_6 [0] : vector<8x256xi32> to vector<256xi32>
    %14 = vector.shape_cast %13 : vector<256xi32> to vector<1x256xi32>
    %15 = vector.broadcast %14 : vector<1x256xi32> to vector<8x256xi32>
    %16 = arith.cmpi eq, %8, %15 : vector<8x256xi32>
    %17 = arith.extui %16 : vector<8x256xi1> to vector<8x256xi32>
    %18 = arith.sitofp %17 : vector<8x256xi32> to vector<8x256xf32>
    %c0_7 = arith.constant 0 : index
    %c0_8 = arith.constant 0 : index
    %19 = vector.load %arg4[%c0_7, %c0_8] : memref<8x256xf32, #tpu.memory_space<vmem>>, vector<8x256xf32>
    tpu.vector_store %arg4[%c0_7, %c0_8], %18 {strides = array<i32>} : memref<8x256xf32, #tpu.memory_space<vmem>>, vector<8x256xf32>,
    return
  }
  func.func @transform_0(%arg0: i32) -> (i32, i32) {
    %c0_i32 = arith.constant 0 : i32
    %c0_i32_0 = arith.constant 0 : i32
    return %arg0, %c0_i32 : i32, i32
  }
  func.func @transform_1(%arg0: i32) -> (i32, i32) {
    %c0_i32 = arith.constant 0 : i32
    %c0_i32_0 = arith.constant 0 : i32
    %c0_i32_1 = arith.constant 0 : i32
    return %c0_i32, %c0_i32_0 : i32, i32
  }
  func.func @transform_2(%arg0: i32) -> (i32, i32) {
    %c0_i32 = arith.constant 0 : i32
    %c0_i32_0 = arith.constant 0 : i32
    %c0_i32_1 = arith.constant 0 : i32
    return %c0_i32, %c0_i32_0 : i32, i32
  }
  func.func @transform_3(%arg0: i32) -> (i32, i32) {
    %c0_i32 = arith.constant 0 : i32
    %c0_i32_0 = arith.constant 0 : i32
    return %c0_i32, %arg0 : i32, i32
  }
}

</mosaic_0001>

<bundles_post_ra>
// kernel: tpu_custom_call.1
= control target key start
LH: loop header
LB: loop body
LE: loop exit
PB: predicated region body
PF: predicated region fallthrough
CT: control target
= control target key end

     0   :  { %vm54_vm0 = vcmask 261120   ;;  %v428_v7 = vmov 0   ;;  %s605_s0 = inlined_call_operand.vmem [shape: f32[256,32], index: 0, kind: input, shape index: {}]   ;;  %s606_s1 = inlined_call_operand.vmem [shape: f32[8,32], index: 1, kind: input, shape index: {}]   ;;  %s607_s2 = inlined_call_operand.vmem [shape: f32[8,1], index: 2, kind: input, shape index: {}]   ;;  %s608_s3 = inlined_call_operand.hbm [shape: f32[8,256], index: 3, kind: output, shape index: {}]  }
   0x1   :  { %v32_v0 = vld [vmem:[%s605_s0 + $0x80] sm:$0xff]  ;;  %v33_v1 = vld [vmem:[%s605_s0 + $0x88] sm:$0xff]  ;;  %vm462_vm1 = vmpackc.low %vm54_vm0, %vm54_vm0  ;;  %403 = vset.pattern.permute.xlu0 %v428_v7 }
   0x2   :  { %v16_v2 = vld [vmem:[%s605_s0] sm:$0xff]  ;;  %v352_v3 = vpack.c.bf16 %v33_v1, %v32_v0  ;;  %v17_v5 = vld [vmem:[%s605_s0 + $0x8] sm:$0xff]  ;;  %v34_v6 = vld [vmem:[%s605_s0 + $0x90] sm:$0xff] }
   0x3   :  { %v355_v8 = vpack.c.bf16 %v17_v5, %v16_v2  ;;  %v35_v9 = vld [vmem:[%s605_s0 + $0x98] sm:$0xff]  ;;  %v18_v11 = vld [vmem:[%s605_s0 + $0x10] sm:$0xff]  ;;  %v36_v13 = vld [vmem:[%s605_s0 + $0xa0] sm:$0xff] }
   0x4   :  { %354 = vmatprep.subr.msk.bf16.mxu0 %vm462_vm1, %v352_v3  ;;  %v358_v10 = vpack.c.bf16 %v35_v9, %v34_v6  ;;  %v19_v12 = vld [vmem:[%s605_s0 + $0x18] sm:$0xff]  ;;  %v37_v14 = vld [vmem:[%s605_s0 + $0xa8] sm:$0xff]  ;;  %v15_v17 = vld [vmem:[%s606_s1] sm:$0xff] }
   0x5   :  { %357 = vmatpush3.bf16.xpose.msk.msra.mxu0 %vm462_vm1, %v355_v8  ;;  %v361_v15 = vpack.c.bf16 %v19_v12, %v18_v11  ;;  %v364_v16 = vpack.c.bf16 %v37_v14, %v36_v13  ;;  %v48_v18 = vld [vmem:[%s607_s2] sm:$0xff] }
   0x6   :  { %360 = vmatprep.subr.msk.bf16.mxu0 %vm462_vm1, %v358_v10 }
   0x7   :  { %8 = vsyncpa [#allocation3], 0  ;;  %350 = vmatprep.mubr.msk.f32.mxu0 %vm54_vm0, %v15_v17  ;;  %v20_v19 = vld [vmem:[%s605_s0 + $0x20] sm:$0xff]  ;;  %v21_v20 = vld [vmem:[%s605_s0 + $0x28] sm:$0xff]  ;;  %51 = vperm.xlu0 %403, %v48_v18   ;;  %v237_v62 = vlaneseq }
   0x8   :  { %v38_v21 = vld [vmem:[%s605_s0 + $0xb0] sm:$0xff]  ;;  %v39_v22 = vld [vmem:[%s605_s0 + $0xb8] sm:$0xff]  ;;  %v367_v23 = vpack.c.bf16 %v21_v20, %v20_v19  ;;  %v40_v27 = vld [vmem:[%s605_s0 + $0xc0] sm:$0xff] }
   0x9   :  { %v370_v24 = vpack.c.bf16 %v39_v22, %v38_v21  ;;  %v22_v25 = vld [vmem:[%s605_s0 + $0x30] sm:$0xff]  ;;  %v23_v26 = vld [vmem:[%s605_s0 + $0x38] sm:$0xff]  ;;  %v41_v28 = vld [vmem:[%s605_s0 + $0xc8] sm:$0xff]  ;;  %v238_v3 = vshrl.u32 %v237_v62, 7  ;;  %v430_v21 = vmov 0.0  }
   0xa   :  { %v373_v29 = vpack.c.bf16 %v23_v26, %v22_v25  ;;  %v376_v30 = vpack.c.bf16 %v41_v28, %v40_v27  ;;  %v24_v31 = vld [vmem:[%s605_s0 + $0x40] sm:$0xff]  ;;  %v25_v32 = vld [vmem:[%s605_s0 + $0x48] sm:$0xff]  ;;  %v42_v33 = vld [vmem:[%s605_s0 + $0xd0] sm:$0xff] }
   0xb   :  { %v43_v34 = vld [vmem:[%s605_s0 + $0xd8] sm:$0xff]  ;;  %v379_v35 = vpack.c.bf16 %v25_v32, %v24_v31  ;;  %v26_v37 = vld [vmem:[%s605_s0 + $0x50] sm:$0xff]  ;;  %v44_v39 = vld [vmem:[%s605_s0 + $0xe0] sm:$0xff] }
   0xc   :  { %v382_v36 = vpack.c.bf16 %v43_v34, %v42_v33  ;;  %v27_v38 = vld [vmem:[%s605_s0 + $0x58] sm:$0xff]  ;;  %v45_v40 = vld [vmem:[%s605_s0 + $0xe8] sm:$0xff]  ;;  %v28_v43 = vld [vmem:[%s605_s0 + $0x60] sm:$0xff] }
   0xd   :  { %363 = vmatpush3.bf16.xpose.msk.msra.mxu0 %vm462_vm1, %v361_v15  ;;  %v385_v41 = vpack.c.bf16 %v27_v38, %v26_v37  ;;  %v388_v42 = vpack.c.bf16 %v45_v40, %v44_v39  ;;  %v29_v44 = vld [vmem:[%s605_s0 + $0x68] sm:$0xff]  ;;  %v46_v45 = vld [vmem:[%s605_s0 + $0xf0] sm:$0xff]  ;;  %v47_v46 = vld [vmem:[%s605_s0 + $0xf8] sm:$0xff] }
   0xe   :  { %366 = vmatprep.subr.msk.bf16.mxu0 %vm462_vm1, %v364_v16  ;;  %v391_v47 = vpack.c.bf16 %v29_v44, %v28_v43  ;;  %v394_v48 = vpack.c.bf16 %v47_v46, %v46_v45  ;;  %v30_v49 = vld [vmem:[%s605_s0 + $0x70] sm:$0xff]  ;;  %v31_v50 = vld [vmem:[%s605_s0 + $0x78] sm:$0xff]  ;;  %s429_s0 = smov [#allocation2]  }
   0xf   :  { %v397_v51 = vpack.c.bf16 %v31_v50, %v30_v49  ;;  %s275_s22 = sshll.u32 %s429_s0, 4  ;;  %s276_s22 = int_to_ptr.vmem [resolvable:$true] %s275_s22 }
  0x10   :  { %s404_s23 = scalar_lea.vmem %s276_s22, 256  ;;  %p409_p1 = scmp.lt.s32.totalorder %s276_s22, %s276_s22 }
  0x11   :  { %p405_p0 = scmp.ne.s32.totalorder %s276_s22, %s404_s23  ;;  %p410_p2 = scmp.lt.s32.totalorder %s404_s23, %s404_s23 }
  0x13   :  { %p411_p3 = por %p410_p2, %p409_p1 }
  0x15   :  { %369 = vmatpush3.bf16.xpose.msk.msra.mxu0 %vm462_vm1, %v367_v23  ;;  %p412_p4 = pnand %p411_p3, %p405_p0 }
  0x16   :  { %372 = vmatprep.subr.msk.bf16.mxu0 %vm462_vm1, %v370_v24 }
  0x1d   :  { %375 = vmatpush3.bf16.xpose.msk.msra.mxu0 %vm462_vm1, %v373_v29 }
  0x1e   :  { %378 = vmatprep.subr.msk.bf16.mxu0 %vm462_vm1, %v376_v30 }
  0x25   :  { %381 = vmatpush3.bf16.xpose.msk.msra.mxu0 %vm462_vm1, %v379_v35 }
  0x26   :  { %384 = vmatprep.subr.msk.bf16.mxu0 %vm462_vm1, %v382_v36 }
  0x2d   :  { %387 = vmatpush3.bf16.xpose.msk.msra.mxu0 %vm462_vm1, %v385_v41 }
  0x2e   :  { %390 = vmatprep.subr.msk.bf16.mxu0 %vm462_vm1, %v388_v42 }
  0x35   :  { %393 = vmatpush3.bf16.xpose.msk.msra.mxu0 %vm462_vm1, %v391_v47 }
  0x36   :  { %396 = vmatprep.subr.msk.bf16.mxu0 %vm462_vm1, %v394_v48 }
  0x3d   :  { %399 = vmatpush3.bf16.xpose.msk.msra.mxu0 %vm462_vm1, %v397_v51 }
  0x44   :  { %351 = vmatmul.mubr.msk.f32.vlgmr.msra.gmra.mrb[0].mxu0 %vm54_vm0, %v15_v17 }
  0x86   :  { %v52_v52 = vpop.permute.xlu0 %51 }
 0x117   :  { %v220_v53 = vpop.f32.mrb[0].mxu0 }
 0x118   :  { %v221_v54 = vadd.f32 %v220_v53, %v52_v52  ;;  %v222_v55 = vpop.f32.mrb[1].mxu0 }
 0x119   :  { %v223_v56 = vadd.f32 %v222_v55, %v52_v52 }
 0x11a   :  { %v225_v57 = vrot.slane %v221_v54, 4 }
 0x11b   :  { %v231_v58 = vrot.slane %v223_v56, 4 }
 0x11c   :  { %v226_v59 = vmax.f32 %v221_v54, %v225_v57 }
 0x11d   :  { %v232_v60 = vmax.f32 %v223_v56, %v231_v58 }
 0x11e   :  { %v227_v61 = vrot.slane %v226_v59, 2 }
 0x11f   :  { %v233_v63 = vrot.slane %v232_v60, 2 }
 0x120   :  { %v228_v0 = vmax.f32 %v226_v59, %v227_v61 }
 0x121   :  { %v234_v1 = vmax.f32 %v232_v60, %v233_v63 }
 0x122   :  { %v229_v2 = vrot.slane %v228_v0, 1 }
 0x123   :  { %v235_v4 = vrot.slane %v234_v1, 1 }
 0x124   :  { %v230_v5 = vmax.f32 %v228_v0, %v229_v2 }
 0x125   :  { %v236_v6 = vmax.f32 %v234_v1, %v235_v4 }
 0x126   :  { %vm239_vm2 = vcmp.ge.f32.partialorder %v221_v54, %v230_v5 }
 0x127   :  { %v241_v7 = vsel %vm239_vm2, %v238_v3, 8  ;;  %vm240_vm3 = vcmp.ge.f32.partialorder %v223_v56, %v236_v6 }
 0x128   :  { %v243_v8 = vrot.slane %v241_v7, 4  ;;  %v242_v9 = vsel %vm240_vm3, %v238_v3, 8 }
 0x129   :  { %v252_v10 = vrot.slane %v242_v9, 4 }
 0x12a   :  { %vm244_vm4 = vcmp.lt.s32.totalorder %v241_v7, %v243_v8 }
 0x12b   :  { %v245_v11 = vsel %vm244_vm4, %v241_v7, %v243_v8  ;;  %vm253_vm5 = vcmp.lt.s32.totalorder %v242_v9, %v252_v10 }
 0x12c   :  { %v246_v12 = vrot.slane %v245_v11, 2  ;;  %v254_v13 = vsel %vm253_vm5, %v242_v9, %v252_v10 }
 0x12d   :  { %v255_v14 = vrot.slane %v254_v13, 2 }
 0x12e   :  { %vm247_vm6 = vcmp.lt.s32.totalorder %v245_v11, %v246_v12 }
 0x12f   :  { %v248_v15 = vsel %vm247_vm6, %v245_v11, %v246_v12  ;;  %vm256_vm7 = vcmp.lt.s32.totalorder %v254_v13, %v255_v14 }
 0x130   :  { %v249_v16 = vrot.slane %v248_v15, 1  ;;  %v257_v17 = vsel %vm256_vm7, %v254_v13, %v255_v14 }
 0x131   :  { %v258_v18 = vrot.slane %v257_v17, 1 }
 0x132   :  { %vm250_vm8 = vcmp.lt.s32.totalorder %v248_v15, %v249_v16 }
 0x133   :  { %v251_v19 = vsel %vm250_vm8, %v248_v15, %v249_v16  ;;  %vm259_vm9 = vcmp.lt.s32.totalorder %v257_v17, %v258_v18 }
 0x134   :  { %v260_v20 = vsel %vm259_vm9, %v257_v17, %v258_v18  ;;  %vm261_vm10 = vcmp.eq.s32.totalorder %v238_v3, %v251_v19 }
 0x135   :  { %vm262_vm11 = vcmp.eq.s32.totalorder %v238_v3, %v260_v20  ;;  %v316_v22 = vsel %vm261_vm10, 1.0, %v430_v21 }
 0x136   :  { %v317_v23 = vsel %vm262_vm11, 1.0, %v430_v21  ;;  %267 = vst [vmem:[#allocation2] sm:$0xff] %v316_v22 }
 0x137   :  { %268 = vst [vmem:[#allocation2 + $0x8] sm:$0xff] %v317_v23 }
 0x138   :  { %415 = shalt.err (!%p412_p4)
}
 0x139   :  { %s416_s26 = scalar_lea.hbm %s608_s3, 256 }
 0x13a   :  { %p417_p5 = scmp.ne.s32.totalorder %s608_s3, %s416_s26  ;;  %p420_p6 = scmp.lt.u32.totalorder %s416_s26, %s608_s3 }
 0x13c   :  { %p422_p7 = pnand %p420_p6, %p417_p5 }
 0x13e   :  { %425 = shalt.err (!%p422_p7)
}
 0x13f   :  { %278 = dma.vmem_to_hbm [thread:$0]  %s276_s22, 256, %s608_s3, [#allocation3]  }
 0x140   :  { %426 = dma.done.wait [#allocation3], 256  }
 0x141   :  { %427 = vsyncadd [#allocation3], 4294967040 }
 0x142   :  { %282 = vsyncpa [#allocation3], 1 }

</bundles_post_ra>
